<compile_context>
chip_gen: v5e
topology: v5e:2x2
jax: 0.10.0
libtpu: 0.0.40
codegen_flags: <defaults>
</compile_context>

<pallas_src>
import functools

import jax
import jax.numpy as jnp
from jax.experimental import pallas as pl
from jax.experimental.pallas import tpu as pltpu


def _round_up(x, m):
    return ((x + m - 1) // m) * m


def _pick_tile(dim, pref, align):
    """Largest `align`-aligned divisor of `dim` that is <= pref, else `dim`."""
    if dim <= pref:
        return dim
    t = (pref // align) * align
    while t >= align:
        if dim % t == 0:
            return t
        t -= align
    return dim  # full dim is always a legal block


def _vmem_limit_bytes():
    """Generation-aware VMEM cap (v5e/v6e: 128 MiB, v7x: 64 MiB per TC)."""
    cap = None
    try:
        info = pltpu.get_tpu_info()
        for name in ("vmem_capacity_bytes", "vmem_size_bytes", "vmem_bytes"):
            cap = getattr(info, name, None)
            if cap:
                break
    except Exception:
        cap = None
    if not cap:
        cap = 64 * 1024 * 1024  # conservative fallback = v7x per-TC VMEM
    return int(min(cap * 3 // 4, 100 * 1024 * 1024))


# --------------------------------------------------------------------------
# Kernel 1: gate matmul + eval-mode sparsemixer top-2 routing (always f32).
# --------------------------------------------------------------------------
def _routing_kernel(x_ref, wg_ref, logits_ref, idx_ref, w_ref, *, jitter_eps):
    logits = jnp.dot(x_ref[...], wg_ref[...], preferred_element_type=jnp.float32)
    logits_ref[...] = logits

    tm, E = logits.shape
    lane = jax.lax.broadcasted_iota(jnp.int32, (tm, E), 1)
    two_eps = jnp.float32(2.0 * jitter_eps)
    tiny = jnp.float32(1e-30)  # guards 0/0 (same boolean result as torch's NaN path)

    # ---- top-1 (eval path of sparsemixer) ----
    max1 = jnp.max(logits, axis=-1, keepdims=True)
    top1 = jnp.min(jnp.where(logits == max1, lane, E), axis=-1, keepdims=True)
    onehot1 = lane == top1
    factor1 = jnp.maximum(jnp.maximum(jnp.abs(logits), max1), tiny)
    drop1 = (max1 - logits) / factor1 > two_eps
    # argmax entry is never dropped, its exp term is exactly 1 -> prob = 1/sum.
    p1 = jnp.where(drop1, 0.0, jnp.exp(jnp.minimum(logits - max1, 0.0)))
    mult1 = 1.0 / jnp.sum(p1, axis=-1, keepdims=True)

    # ---- top-2 ----
    masked = jnp.where(onehot1, -jnp.inf, logits)
    max2 = jnp.max(masked, axis=-1, keepdims=True)
    top2 = jnp.min(jnp.where(masked == max2, lane, E), axis=-1, keepdims=True)
    factor2 = jnp.maximum(jnp.maximum(jnp.abs(logits), max2), tiny)
    drop2 = (max2 - logits) / factor2 > two_eps
    # minimum() clamp keeps exp() finite at the (masked-out) top-1 lane.
    p2 = jnp.where(drop2 | onehot1, 0.0, jnp.exp(jnp.minimum(logits - max2, 0.0)))
    mult2 = 1.0 / jnp.sum(p2, axis=-1, keepdims=True)

    k_lane = jax.lax.broadcasted_iota(jnp.int32, (tm, 2), 1)
    idx_ref[...] = jnp.where(k_lane == 0, top1, top2).astype(jnp.int32)
    w_ref[...] = jnp.where(k_lane == 0, mult1, mult2)


# --------------------------------------------------------------------------
# Kernel 2: grouped expert SwiGLU MLP.
#   grid = (block, F-tile); block -> expert mapping is scalar-prefetched.
# --------------------------------------------------------------------------
def _expert_kernel(be_ref, bv_ref, xg_ref, w13_ref, w2_ref, out_ref, *, tf):
    b = pl.program_id(0)
    f = pl.program_id(1)

    @pl.when(f == 0)
    def _init():
        out_ref[...] = jnp.zeros_like(out_ref)

    # Padding blocks (beyond the last real block) carry no routed rows.
    @pl.when(bv_ref[b] != 0)
    def _compute():
        x = xg_ref[...]                                   # (tm, H) compute dtype
        gu = jnp.dot(x, w13_ref[0], preferred_element_type=jnp.float32)
        g = gu[:, :tf]
        u = gu[:, tf:]
        h = (g * jax.nn.sigmoid(g)) * u                   # SiLU(x w1) * (x w3), f32
        out_ref[...] += jnp.dot(h.astype(w2_ref.dtype), w2_ref[0],
                                preferred_element_type=jnp.float32)


# --------------------------------------------------------------------------
# Wrapper
# --------------------------------------------------------------------------
def grin_moe_block(hidden_states, wg_t, w1_t, w3_t, w2_t, *, jitter_eps,
                   compute_dtype=jnp.bfloat16, tm_pref=512, tf_pref=512):
    B, S, H = hidden_states.shape
    E, _, F = w1_t.shape
    T = B * S
    K = 2  # top_k
    x = hidden_states.reshape(T, H).astype(jnp.float32)   # routing always f32

    # ---------------- routing ----------------
    tm_r = min(256, _round_up(T, 8))
    T_pad = _round_up(T, tm_r)
    x_r = x if T_pad == T else jnp.pad(x, ((0, T_pad - T), (0, 0)))
    n_r = T_pad // tm_r

    logits_p, idx_p, w_p = pl.pallas_call(
        functools.partial(_routing_kernel, jitter_eps=jitter_eps),
        out_shape=(jax.ShapeDtypeStruct((T_pad, E), jnp.float32),
                   jax.ShapeDtypeStruct((T_pad, K), jnp.int32),
                   jax.ShapeDtypeStruct((T_pad, K), jnp.float32)),
        grid_spec=pltpu.PrefetchScalarGridSpec(
            num_scalar_prefetch=0,
            grid=(n_r,),
            in_specs=[pl.BlockSpec((tm_r, H), lambda i: (i, 0)),
                      pl.BlockSpec((H, E), lambda i: (0, 0))],
            out_specs=[pl.BlockSpec((tm_r, E), lambda i: (i, 0)),
                       pl.BlockSpec((tm_r, K), lambda i: (i, 0)),
                       pl.BlockSpec((tm_r, K), lambda i: (i, 0))]),
        compiler_params=pltpu.CompilerParams(
            dimension_semantics=("parallel",)),
    )(x_r, wg_t.astype(jnp.float32))

    router_logits = logits_p[:T]
    topk_idx = idx_p[:T]                                  # (T, 2) int32
    topk_w = w_p[:T]                                      # (T, 2) f32

    # ---------------- tile / VMEM sizing (generation-aware) ----------------
    vmem_limit = _vmem_limit_bytes()
    cbytes = jnp.dtype(compute_dtype).itemsize
    tm = max(8, min(tm_pref, _round_up(T * K, 8)))
    tf = _pick_tile(F, tf_pref, 128)

    def _usage(tm_, tf_):
        return (2 * tm_ * H * cbytes          # x blocks (double-buffered)
                + 2 * H * 2 * tf_ * cbytes    # fused w1/w3 blocks
                + 2 * tf_ * H * cbytes        # w2 blocks
                + 2 * tm_ * H * 4)            # f32 output block

    budget = int(vmem_limit * 0.6)
    for _ in range(16):
        if _usage(tm, tf) <= budget:
            break
        if tf > 128:
            new_tf = _pick_tile(F, max(128, tf // 2), 128)
            if new_tf < tf:
                tf = new_tf
                continue
        if tm > 128:
            tm = max(128, ((tm // 2) // 8) * 8)
            continue
        break
    n_f = F // tf

    # ---------------- token grouping (host-side, static shapes) ----------------
    flat_expert = topk_idx.reshape(-1)                          # (T*K,), token-major
    flat_weight = topk_w.reshape(-1)                            # (T*K,)
    flat_token = jnp.repeat(jnp.arange(T, dtype=jnp.int32), K)  # (T*K,)

    order = jnp.argsort(flat_expert)                            # stable by default
    rank = jnp.zeros((T * K,), jnp.int32).at[order].set(
        jnp.arange(T * K, dtype=jnp.int32))
    group_sizes = jnp.zeros((E,), jnp.int32).at[flat_expert].add(1)
    group_offset = jnp.concatenate(
        [jnp.zeros((1,), jnp.int32), jnp.cumsum(group_sizes)[:-1]])
    blocks_per_expert = (group_sizes + tm - 1) // tm
    block_ends = jnp.cumsum(blocks_per_expert)
    block_base = block_ends - blocks_per_expert
    num_real_blocks = block_ends[-1]

    G = (T * K + tm - 1) // tm + E            # static upper bound on #blocks

    within = rank - group_offset[flat_expert]
    padded_pos = block_base[flat_expert] * tm + within          # (T*K,)

    padded_token = jnp.zeros((G * tm,), jnp.int32).at[padded_pos].set(flat_token)
    x_grouped = x.astype(compute_dtype)[padded_token]           # (G*tm, H)

    b_ids = jnp.arange(G, dtype=jnp.int32)
    block_expert = jnp.minimum(
        jnp.searchsorted(block_ends, b_ids, side='right'), E - 1).astype(jnp.int32)
    block_valid = (b_ids < num_real_blocks).astype(jnp.int32)

    # ---------------- weight packing: fused bf16 [w1 | w3] per F-tile ----------
    # TODO(synk): hoist this one-time repack to weight-load time in real use.
    w1c = w1_t.astype(compute_dtype).reshape(E, H, n_f, tf)
    w3c = w3_t.astype(compute_dtype).reshape(E, H, n_f, tf)
    w13 = jnp.concatenate([w1c, w3c], axis=-1).reshape(E, H, 2 * F)
    w2c = w2_t.astype(compute_dtype)

    # ---------------- grouped expert kernel ----------------
    y_grouped = pl.pallas_call(
        functools.partial(_expert_kernel, tf=tf),
        out_shape=jax.ShapeDtypeStruct((G * tm, H), jnp.float32),
        grid_spec=pltpu.PrefetchScalarGridSpec(
            num_scalar_prefetch=2,
            grid=(G, n_f),
            in_specs=[
                pl.BlockSpec((tm, H), lambda b, f, be, bv: (b, 0)),
                pl.BlockSpec((1, H, 2 * tf), lambda b, f, be, bv: (be[b], 0, f)),
                pl.BlockSpec((1, tf, H), lambda b, f, be, bv: (be[b], f, 0)),
            ],
            out_specs=pl.BlockSpec((tm, H), lambda b, f, be, bv: (b, 0))),
        compiler_params=pltpu.CompilerParams(
            dimension_semantics=("parallel", "arbitrary"),
            vmem_limit_bytes=vmem_limit),
    )(block_expert, block_valid, x_grouped, w13, w2c)

    # ---------------- un-group + combine ----------------
    y_assign = y_grouped[padded_pos]                            # (T*K, H) f32
    out = (y_assign * flat_weight[:, None]).reshape(T, K, H).sum(axis=1)
    out = out.astype(hidden_states.dtype)
    return out.reshape(B, S, H), router_logits


# --------------------------------------------------------------------------
# Plain-JAX reference (eval-mode forward, high-precision matmuls).
# --------------------------------------------------------------------------
def ref_forward(hidden_states, wg_t, w1_t, w3_t, w2_t, jitter_eps):
    B, S, H = hidden_states.shape
    hp = jax.lax.Precision.HIGHEST
    x = hidden_states.reshape(-1, H).astype(jnp.float32)
    logits = jnp.dot(x, wg_t, precision=hp)
    E = logits.shape[-1]

    max1 = logits.max(-1, keepdims=True)
    top1 = jnp.argmax(logits, -1)
    oh1 = jax.nn.one_hot(top1, E, dtype=bool)
    drop1 = (max1 - logits) / jnp.maximum(jnp.abs(logits), max1) > 2 * jitter_eps
    p1 = jax.nn.softmax(jnp.where(drop1, -jnp.inf, logits), -1)
    mult1 = jnp.take_along_axis(p1, top1[:, None], -1)

    masked = jnp.where(oh1, -jnp.inf, logits)
    max2 = masked.max(-1, keepdims=True)
    top2 = jnp.argmax(masked, -1)
    drop2 = (max2 - logits) / jnp.maximum(jnp.abs(logits), max2) > 2 * jitter_eps
    p2 = jax.nn.softmax(jnp.where(drop2, -jnp.inf, masked), -1)
    mult2 = jnp.take_along_axis(p2, top2[:, None], -1)

    out = jnp.zeros_like(x)
    for e in range(E):
        g = jnp.dot(x, w1_t[e], precision=hp)
        u = jnp.dot(x, w3_t[e], precision=hp)
        y = jnp.dot(jax.nn.silu(g) * u, w2_t[e], precision=hp)
        w = mult1 * (top1[:, None] == e) + mult2 * (top2[:, None] == e)
        out = out + y * w
    return out.reshape(B, S, H).astype(hidden_states.dtype), logits


if __name__ == "__main__":
    # Small config consistent with the module: hidden=32, ffn=64, 8 experts, top-2.
    B, S, H, F, E = 2, 8, 32, 64, 8
    router_jitter_noise = 0.01

    key = jax.random.PRNGKey(0)
    ks = jax.random.split(key, 5)
    x = jax.random.normal(ks[0], (B, S, H), jnp.float32)
    wg_t = 0.05 * jax.random.normal(ks[1], (H, E), jnp.float32)
    w1_t = 0.05 * jax.random.normal(ks[2], (E, H, F), jnp.float32)
    w3_t = 0.05 * jax.random.normal(ks[3], (E, H, F), jnp.float32)
    w2_t = 0.05 * jax.random.normal(ks[4], (E, F, H), jnp.float32)

    ref_out, ref_logits = ref_forward(x, wg_t, w1_t, w3_t, w2_t,
                                      router_jitter_noise)

    # f32 compute path (tight tolerance).
    fwd32 = jax.jit(functools.partial(grin_moe_block,
                                      jitter_eps=router_jitter_noise,
                                      compute_dtype=jnp.float32))
    out32, logits32 = fwd32(x, wg_t, w1_t, w3_t, w2_t)
    jax.block_until_ready((out32, logits32))
    assert jnp.allclose(logits32, ref_logits, atol=1e-4, rtol=1e-4), "logits mismatch (f32)"
    assert jnp.allclose(out32, ref_out, atol=1e-4, rtol=1e-4), "output mismatch (f32)"

    # default bf16-streamed path (bf16 MXU tolerance).
    fwd16 = jax.jit(functools.partial(grin_moe_block,
                                      jitter_eps=router_jitter_noise))
    out16, logits16 = fwd16(x, wg_t, w1_t, w3_t, w2_t)
    jax.block_until_ready((out16, logits16))
    assert jnp.allclose(logits16, ref_logits, atol=1e-4, rtol=1e-4), "logits mismatch (bf16)"
    assert jnp.allclose(out16, ref_out, atol=5e-3, rtol=5e-2), "output mismatch (bf16)"

    print("KERNEL_OK")
</pallas_src>

<mosaic_0001>
module attributes {stable_mosaic.version = 11 : i64} {
  func.func @_routing_kernel(%arg0: i32, %arg1: memref<16x32xf32, #tpu.memory_space<vmem>>, %arg2: memref<32x8xf32, #tpu.memory_space<vmem>>, %arg3: memref<16x8xf32, #tpu.memory_space<vmem>>, %arg4: memref<16x2xi32, #tpu.memory_space<vmem>>, %arg5: memref<16x2xf32, #tpu.memory_space<vmem>>) attributes {dimension_semantics = [#tpu.dimension_semantics<parallel>], iteration_bounds = array<i64: 1>, scalar_prefetch = 0 : i64, scratch_operands = 0 : i64, tpu.core_type = #tpu.core_type<tc>, window_params = [{transform_indices = @transform_0, window_bounds = array<i64: 16, 32>}, {pipeline_mode = #tpu.pipeline_mode<synchronous>, transform_indices = @transform_1, window_bounds = array<i64: 32, 8>}, {transform_indices = @transform_2, window_bounds = array<i64: 16, 8>}, {transform_indices = @transform_3, window_bounds = array<i64: 16, 2>}, {transform_indices = @transform_4, window_bounds = array<i64: 16, 2>}]} {
    %c0 = arith.constant 0 : index
    %c0_0 = arith.constant 0 : index
    %0 = vector.load %arg1[%c0, %c0_0] : memref<16x32xf32, #tpu.memory_space<vmem>>, vector<16x32xf32>
    %c0_1 = arith.constant 0 : index
    %c0_2 = arith.constant 0 : index
    %1 = vector.load %arg2[%c0_1, %c0_2] : memref<32x8xf32, #tpu.memory_space<vmem>>, vector<32x8xf32>
    %cst = arith.constant dense<0.000000e+00> : vector<16x8xf32>
    %2 = tpu.matmul %0, %1, %cst {dimension_numbers = #tpu.dot_dimension_numbers<[1], [0], [0], [1], [0, 0, 1, 1], [], []>} : vector<16x32xf32>, vector<32x8xf32>, vector<16x8xf32> -> vector<16x8xf32>
    %c0_3 = arith.constant 0 : index
    %c0_4 = arith.constant 0 : index
    %3 = vector.load %arg3[%c0_3, %c0_4] : memref<16x8xf32, #tpu.memory_space<vmem>>, vector<16x8xf32>
    tpu.vector_store %arg3[%c0_3, %c0_4], %2 {strides = array<i32>} : memref<16x8xf32, #tpu.memory_space<vmem>>, vector<16x8xf32>,
    %4 = tpu.iota {dimensions = array<i32: 1>} : vector<16x8xi32>
    %cst_5 = arith.constant dense<0xFF800000> : vector<16xf32>
    %5 = vector.multi_reduction <maximumf>, %2, %cst_5 [1] : vector<16x8xf32> to vector<16xf32>
    %6 = vector.shape_cast %5 : vector<16xf32> to vector<16x1xf32>
    %7 = vector.broadcast %6 : vector<16x1xf32> to vector<16x8xf32>
    %8 = arith.cmpf oeq, %2, %7 : vector<16x8xf32>
    %c8_i32 = arith.constant 8 : i32
    %9 = vector.broadcast %c8_i32 : i32 to vector<16x8xi32>
    %10 = arith.select %8, %4, %9 : vector<16x8xi1>, vector<16x8xi32>
    %cst_6 = arith.constant dense<2147483647> : vector<16xi32>
    %11 = vector.multi_reduction <minsi>, %10, %cst_6 [1] : vector<16x8xi32> to vector<16xi32>
    %12 = vector.shape_cast %11 : vector<16xi32> to vector<16x1xi32>
    %13 = vector.broadcast %12 : vector<16x1xi32> to vector<16x8xi32>
    %14 = arith.cmpi eq, %4, %13 : vector<16x8xi32>
    %15 = math.absf %2 : vector<16x8xf32>
    %16 = vector.broadcast %6 : vector<16x1xf32> to vector<16x8xf32>
    %17 = arith.maximumf %15, %16 : vector<16x8xf32>
    %cst_7 = arith.constant 1.000000e-30 : f32
    %18 = vector.broadcast %cst_7 : f32 to vector<16x8xf32>
    %19 = arith.maximumf %17, %18 : vector<16x8xf32>
    %20 = vector.broadcast %6 : vector<16x1xf32> to vector<16x8xf32>
    %21 = arith.subf %20, %2 : vector<16x8xf32>
    %22 = arith.divf %21, %19 : vector<16x8xf32>
    %cst_8 = arith.constant 2.000000e-02 : f32
    %23 = vector.broadcast %cst_8 : f32 to vector<16x8xf32>
    %24 = arith.cmpf ogt, %22, %23 : vector<16x8xf32>
    %25 = vector.broadcast %6 : vector<16x1xf32> to vector<16x8xf32>
    %26 = arith.subf %2, %25 : vector<16x8xf32>
    %cst_9 = arith.constant 0.000000e+00 : f32
    %27 = vector.broadcast %cst_9 : f32 to vector<16x8xf32>
    %28 = arith.minimumf %26, %27 : vector<16x8xf32>
    %29 = math.exp %28 : vector<16x8xf32>
    %cst_10 = arith.constant 0.000000e+00 : f32
    %30 = vector.broadcast %cst_10 : f32 to vector<16x8xf32>
    %31 = arith.select %24, %30, %29 : vector<16x8xi1>, vector<16x8xf32>
    %cst_11 = arith.constant dense<0.000000e+00> : vector<16xf32>
    %32 = vector.multi_reduction <add>, %31, %cst_11 [1] : vector<16x8xf32> to vector<16xf32>
    %33 = vector.shape_cast %32 : vector<16xf32> to vector<16x1xf32>
    %cst_12 = arith.constant 1.000000e+00 : f32
    %34 = vector.broadcast %cst_12 : f32 to vector<16x1xf32>
    %35 = arith.divf %34, %33 : vector<16x1xf32>
    %cst_13 = arith.constant 0xFF800000 : f32
    %36 = vector.broadcast %cst_13 : f32 to vector<16x8xf32>
    %37 = arith.select %14, %36, %2 : vector<16x8xi1>, vector<16x8xf32>
    %cst_14 = arith.constant dense<0xFF800000> : vector<16xf32>
    %38 = vector.multi_reduction <maximumf>, %37, %cst_14 [1] : vector<16x8xf32> to vector<16xf32>
    %39 = vector.shape_cast %38 : vector<16xf32> to vector<16x1xf32>
    %40 = vector.broadcast %39 : vector<16x1xf32> to vector<16x8xf32>
    %41 = arith.cmpf oeq, %37, %40 : vector<16x8xf32>
    %c8_i32_15 = arith.constant 8 : i32
    %42 = vector.broadcast %c8_i32_15 : i32 to vector<16x8xi32>
    %43 = arith.select %41, %4, %42 : vector<16x8xi1>, vector<16x8xi32>
    %cst_16 = arith.constant dense<2147483647> : vector<16xi32>
    %44 = vector.multi_reduction <minsi>, %43, %cst_16 [1] : vector<16x8xi32> to vector<16xi32>
    %45 = vector.shape_cast %44 : vector<16xi32> to vector<16x1xi32>
    %46 = math.absf %2 : vector<16x8xf32>
    %47 = vector.broadcast %39 : vector<16x1xf32> to vector<16x8xf32>
    %48 = arith.maximumf %46, %47 : vector<16x8xf32>
    %cst_17 = arith.constant 1.000000e-30 : f32
    %49 = vector.broadcast %cst_17 : f32 to vector<16x8xf32>
    %50 = arith.maximumf %48, %49 : vector<16x8xf32>
    %51 = vector.broadcast %39 : vector<16x1xf32> to vector<16x8xf32>
    %52 = arith.subf %51, %2 : vector<16x8xf32>
    %53 = arith.divf %52, %50 : vector<16x8xf32>
    %cst_18 = arith.constant 2.000000e-02 : f32
    %54 = vector.broadcast %cst_18 : f32 to vector<16x8xf32>
    %55 = arith.cmpf ogt, %53, %54 : vector<16x8xf32>
    %56 = arith.ori %55, %14 : vector<16x8xi1>
    %57 = vector.broadcast %39 : vector<16x1xf32> to vector<16x8xf32>
    %58 = arith.subf %2, %57 : vector<16x8xf32>
    %cst_19 = arith.constant 0.000000e+00 : f32
    %59 = vector.broadcast %cst_19 : f32 to vector<16x8xf32>
    %60 = arith.minimumf %58, %59 : vector<16x8xf32>
    %61 = math.exp %60 : vector<16x8xf32>
    %cst_20 = arith.constant 0.000000e+00 : f32
    %62 = vector.broadcast %cst_20 : f32 to vector<16x8xf32>
    %63 = arith.select %56, %62, %61 : vector<16x8xi1>, vector<16x8xf32>
    %cst_21 = arith.constant dense<0.000000e+00> : vector<16xf32>
    %64 = vector.multi_reduction <add>, %63, %cst_21 [1] : vector<16x8xf32> to vector<16xf32>
    %65 = vector.shape_cast %64 : vector<16xf32> to vector<16x1xf32>
    %cst_22 = arith.constant 1.000000e+00 : f32
    %66 = vector.broadcast %cst_22 : f32 to vector<16x1xf32>
    %67 = arith.divf %66, %65 : vector<16x1xf32>
    %68 = tpu.iota {dimensions = array<i32: 1>} : vector<16x2xi32>
    %c0_i32 = arith.constant 0 : i32
    %69 = vector.broadcast %c0_i32 : i32 to vector<16x2xi32>
    %70 = arith.cmpi eq, %68, %69 : vector<16x2xi32>
    %71 = vector.shape_cast %12 : vector<16x1xi32> to vector<16x1xi32>
    %72 = vector.broadcast %71 : vector<16x1xi32> to vector<16x2xi32>
    %73 = vector.shape_cast %45 : vector<16x1xi32> to vector<16x1xi32>
    %74 = vector.broadcast %73 : vector<16x1xi32> to vector<16x2xi32>
    %75 = arith.select %70, %72, %74 : vector<16x2xi1>, vector<16x2xi32>
    %c0_23 = arith.constant 0 : index
    %c0_24 = arith.constant 0 : index
    %76 = vector.load %arg4[%c0_23, %c0_24] : memref<16x2xi32, #tpu.memory_space<vmem>>, vector<16x2xi32>
    tpu.vector_store %arg4[%c0_23, %c0_24], %75 {strides = array<i32>} : memref<16x2xi32, #tpu.memory_space<vmem>>, vector<16x2xi32>,
    %c0_i32_25 = arith.constant 0 : i32
    %77 = vector.broadcast %c0_i32_25 : i32 to vector<16x2xi32>
    %78 = arith.cmpi eq, %68, %77 : vector<16x2xi32>
    %79 = vector.shape_cast %35 : vector<16x1xf32> to vector<16x1xf32>
    %80 = vector.broadcast %79 : vector<16x1xf32> to vector<16x2xf32>
    %81 = vector.shape_cast %67 : vector<16x1xf32> to vector<16x1xf32>
    %82 = vector.broadcast %81 : vector<16x1xf32> to vector<16x2xf32>
    %83 = arith.select %78, %80, %82 : vector<16x2xi1>, vector<16x2xf32>
    %c0_26 = arith.constant 0 : index
    %c0_27 = arith.constant 0 : index
    %84 = vector.load %arg5[%c0_26, %c0_27] : memref<16x2xf32, #tpu.memory_space<vmem>>, vector<16x2xf32>
    tpu.vector_store %arg5[%c0_26, %c0_27], %83 {strides = array<i32>} : memref<16x2xf32, #tpu.memory_space<vmem>>, vector<16x2xf32>,
    return
  }
  func.func @transform_0(%arg0: i32) -> (i32, i32) {
    %c0_i32 = arith.constant 0 : i32
    %c0_i32_0 = arith.constant 0 : i32
    return %arg0, %c0_i32 : i32, i32
  }
  func.func @transform_1(%arg0: i32) -> (i32, i32) {
    %c0_i32 = arith.constant 0 : i32
    %c0_i32_0 = arith.constant 0 : i32
    %c0_i32_1 = arith.constant 0 : i32
    return %c0_i32, %c0_i32_0 : i32, i32
  }
  func.func @transform_2(%arg0: i32) -> (i32, i32) {
    %c0_i32 = arith.constant 0 : i32
    %c0_i32_0 = arith.constant 0 : i32
    return %arg0, %c0_i32 : i32, i32
  }
  func.func @transform_3(%arg0: i32) -> (i32, i32) {
    %c0_i32 = arith.constant 0 : i32
    %c0_i32_0 = arith.constant 0 : i32
    return %arg0, %c0_i32 : i32, i32
  }
  func.func @transform_4(%arg0: i32) -> (i32, i32) {
    %c0_i32 = arith.constant 0 : i32
    %c0_i32_0 = arith.constant 0 : i32
    return %arg0, %c0_i32 : i32, i32
  }
}

module attributes {stable_mosaic.version = 11 : i64} {
  func.func @_expert_kernel(%arg0: i32, %arg1: i32, %arg2: memref<9xi32, #tpu.memory_space<smem>>, %arg3: memref<9xi32, #tpu.memory_space<smem>>, %arg4: memref<32x32xf32, #tpu.memory_space<vmem>>, %arg5: memref<1x32x128xf32, #tpu.memory_space<vmem>>, %arg6: memref<1x64x32xf32, #tpu.memory_space<vmem>>, %arg7: memref<32x32xf32, #tpu.memory_space<vmem>>) attributes {dimension_semantics = [#tpu.dimension_semantics<parallel>, #tpu.dimension_semantics<arbitrary>], iteration_bounds = array<i64: 9, 1>, scalar_prefetch = 2 : i64, scratch_operands = 0 : i64, tpu.core_type = #tpu.core_type<tc>, window_params = [{transform_indices = @transform_0, window_bounds = array<i64: 32, 32>}, {transform_indices = @transform_1, window_bounds = array<i64: 1, 32, 128>}, {transform_indices = @transform_2, window_bounds = array<i64: 1, 64, 32>}, {transform_indices = @transform_3, window_bounds = array<i64: 32, 32>}]} {
    %c0_i32 = arith.constant 0 : i32
    %0 = arith.cmpi eq, %arg1, %c0_i32 : i32
    %1 = arith.extui %0 : i1 to i32
    %c0_i32_0 = arith.constant 0 : i32
    %2 = arith.cmpi ne, %1, %c0_i32_0 : i32
    scf.if %2 {
      %cst = arith.constant 0.000000e+00 : f32
      %8 = vector.broadcast %cst : f32 to vector<32x32xf32>
      %c0 = arith.constant 0 : index
      %c0_3 = arith.constant 0 : index
      %9 = vector.load %arg7[%c0, %c0_3] : memref<32x32xf32, #tpu.memory_space<vmem>>, vector<32x32xf32>
      tpu.vector_store %arg7[%c0, %c0_3], %8 {strides = array<i32>} : memref<32x32xf32, #tpu.memory_space<vmem>>, vector<32x32xf32>,
    } else {
    }
    %3 = arith.index_cast %arg0 : i32 to index
    %4 = memref.load %arg3[%3] : memref<9xi32, #tpu.memory_space<smem>>
    %c0_i32_1 = arith.constant 0 : i32
    %5 = arith.cmpi ne, %4, %c0_i32_1 : i32
    %6 = arith.extui %5 : i1 to i32
    %c0_i32_2 = arith.constant 0 : i32
    %7 = arith.cmpi ne, %6, %c0_i32_2 : i32
    scf.if %7 {
      %c0 = arith.constant 0 : index
      %c0_3 = arith.constant 0 : index
      %8 = vector.load %arg4[%c0, %c0_3] : memref<32x32xf32, #tpu.memory_space<vmem>>, vector<32x32xf32>
      %c0_4 = arith.constant 0 : index
      %c0_5 = arith.constant 0 : index
      %c0_6 = arith.constant 0 : index
      %9 = vector.load %arg5[%c0_4, %c0_5, %c0_6] : memref<1x32x128xf32, #tpu.memory_space<vmem>>, vector<1x32x128xf32>
      %10 = vector.shape_cast %9 : vector<1x32x128xf32> to vector<32x128xf32>
      %cst = arith.constant dense<0.000000e+00> : vector<32x128xf32>
      %11 = tpu.matmul %8, %10, %cst {dimension_numbers = #tpu.dot_dimension_numbers<[1], [0], [0], [1], [0, 0, 1, 1], [], []>} : vector<32x32xf32>, vector<32x128xf32>, vector<32x128xf32> -> vector<32x128xf32>
      %12 = vector.extract_strided_slice %11 {offsets = [0, 0], sizes = [32, 64], strides = [1, 1]} : vector<32x128xf32> to vector<32x64xf32>
      %13 = vector.extract_strided_slice %11 {offsets = [0, 64], sizes = [32, 64], strides = [1, 1]} : vector<32x128xf32> to vector<32x64xf32>
      %14 = arith.negf %12 : vector<32x64xf32>
      %15 = math.exp %14 : vector<32x64xf32>
      %cst_7 = arith.constant 1.000000e+00 : f32
      %16 = vector.broadcast %cst_7 : f32 to vector<32x64xf32>
      %17 = arith.addf %16, %15 : vector<32x64xf32>
      %18 = arith.divf %16, %17 : vector<32x64xf32>
      %19 = arith.mulf %12, %18 : vector<32x64xf32>
      %20 = arith.mulf %19, %13 : vector<32x64xf32>
      %c0_8 = arith.constant 0 : index
      %c0_9 = arith.constant 0 : index
      %21 = vector.load %arg7[%c0_8, %c0_9] : memref<32x32xf32, #tpu.memory_space<vmem>>, vector<32x32xf32>
      %c0_10 = arith.constant 0 : index
      %c0_11 = arith.constant 0 : index
      %c0_12 = arith.constant 0 : index
      %22 = vector.load %arg6[%c0_10, %c0_11, %c0_12] : memref<1x64x32xf32, #tpu.memory_space<vmem>>, vector<1x64x32xf32>
      %23 = vector.shape_cast %22 : vector<1x64x32xf32> to vector<64x32xf32>
      %cst_13 = arith.constant dense<0.000000e+00> : vector<32x32xf32>
      %24 = tpu.matmul %20, %23, %cst_13 {dimension_numbers = #tpu.dot_dimension_numbers<[1], [0], [0], [1], [0, 0, 1, 1], [], []>} : vector<32x64xf32>, vector<64x32xf32>, vector<32x32xf32> -> vector<32x32xf32>
      %25 = arith.addf %21, %24 : vector<32x32xf32>
      %c0_14 = arith.constant 0 : index
      %c0_15 = arith.constant 0 : index
      %26 = vector.load %arg7[%c0_14, %c0_15] : memref<32x32xf32, #tpu.memory_space<vmem>>, vector<32x32xf32>
      tpu.vector_store %arg7[%c0_14, %c0_15], %25 {strides = array<i32>} : memref<32x32xf32, #tpu.memory_space<vmem>>, vector<32x32xf32>,
    } else {
    }
    return
  }
  func.func @transform_0(%arg0: i32, %arg1: i32, %arg2: memref<9xi32, #tpu.memory_space<smem>>, %arg3: memref<9xi32, #tpu.memory_space<smem>>) -> (i32, i32) {
    %c0_i32 = arith.constant 0 : i32
    %c0_i32_0 = arith.constant 0 : i32
    return %arg0, %c0_i32 : i32, i32
  }
  func.func @transform_1(%arg0: i32, %arg1: i32, %arg2: memref<9xi32, #tpu.memory_space<smem>>, %arg3: memref<9xi32, #tpu.memory_space<smem>>) -> (i32, i32, i32) {
    %0 = arith.index_cast %arg0 : i32 to index
    %1 = memref.load %arg2[%0] : memref<9xi32, #tpu.memory_space<smem>>
    %c0_i32 = arith.constant 0 : i32
    %c0_i32_0 = arith.constant 0 : i32
    return %1, %c0_i32, %arg1 : i32, i32, i32
  }
  func.func @transform_2(%arg0: i32, %arg1: i32, %arg2: memref<9xi32, #tpu.memory_space<smem>>, %arg3: memref<9xi32, #tpu.memory_space<smem>>) -> (i32, i32, i32) {
    %0 = arith.index_cast %arg0 : i32 to index
    %1 = memref.load %arg2[%0] : memref<9xi32, #tpu.memory_space<smem>>
    %c0_i32 = arith.constant 0 : i32
    %c0_i32_0 = arith.constant 0 : i32
    return %1, %arg1, %c0_i32 : i32, i32, i32
  }
  func.func @transform_3(%arg0: i32, %arg1: i32, %arg2: memref<9xi32, #tpu.memory_space<smem>>, %arg3: memref<9xi32, #tpu.memory_space<smem>>) -> (i32, i32) {
    %c0_i32 = arith.constant 0 : i32
    %c0_i32_0 = arith.constant 0 : i32
    return %arg0, %c0_i32 : i32, i32
  }
}

</mosaic_0001>

<bundles_post_ra>
// kernel: custom-call.1
= control target key start
LH: loop header
LB: loop body
LE: loop exit
PB: predicated region body
PF: predicated region fallthrough
CT: control target
= control target key end

     0   :  { %s6_s0 = inlined_call_operand.vmem [shape: u32[9], index: 0, kind: output, shape index: {}]  }

// kernel: grin_moe_block.2
= control target key start
LH: loop header
LB: loop body
LE: loop exit
PB: predicated region body
PF: predicated region fallthrough
CT: control target
= control target key end

     0   :  { %vm20_vm0 = vcmask 261120   ;;  %vm50_vm1 = vcmask 64512   ;;  %v53_v10 = vlaneseq  ;;  %s547_s1 = inlined_call_operand.vmem [shape: f32[32,8], index: 1, kind: input, shape index: {}]   ;;  %s548_s0 = inlined_call_operand.vmem [shape: f32[16,32], index: 0, kind: input, shape index: {}]   ;;  %s549_s2 = inlined_call_operand.vmem [shape: f32[16,8], index: 2, kind: output, shape index: {0}]   ;;  %s550_s4 = inlined_call_operand.vmem [shape: f32[16,2], index: 4, kind: output, shape index: {2}]   ;;  %s551_s3 = inlined_call_operand.vmem [shape: s32[16,2], index: 3, kind: output, shape index: {1}]  }
   0x1   :  { %v19_v0 = vld [vmem:[%s547_s1 + $0x18] sm:$0xff]  ;;  %v18_v1 = vld [vmem:[%s547_s1 + $0x10] sm:$0xff]  ;;  %v17_v2 = vld [vmem:[%s547_s1 + $0x8] sm:$0xff] }
   0x2   :  { %39 = vmatpush.msra.mxu0 %v19_v0  ;;  %335 = vmatpush.msra.mxu1 %v19_v0  ;;  %v16_v3 = vld [vmem:[%s547_s1] sm:$0xff]  ;;  %v15_v5 = vld [vmem:[%s548_s0 + $0x8] sm:$0xff]  ;;  %v424_v11 = vand.u32 127, %v53_v10 }
   0x3   :  { %v14_v4 = vld [vmem:[%s548_s0] sm:$0xff] }
   0x4   :  { %40 = vmatpush.msra.mxu0 %v18_v1  ;;  %336 = vmatpush.msra.mxu1 %v18_v1 }
   0x6   :  { %41 = vmatpush.msra.mxu0 %v17_v2  ;;  %337 = vmatpush.msra.mxu1 %v17_v2 }
   0x8   :  { %42 = vmatpush.msra.mxu0 %v16_v3  ;;  %338 = vmatpush.msra.mxu1 %v16_v3 }
   0x9   :  { %333 = vmatmul.msk.f32.vlgmr.msra.gmra.mxu0 %vm20_vm0, %v14_v4  ;;  %334 = vmatmul.msk.f32.vlgmr.msra.gmra.mxu1 %vm20_vm0, %v15_v5 }
  0x86   :  { %v406_v6 = vpop.f32.mrf.mxu0  ;;  %v408_v7 = vpop.f32.mrf.mxu1 }
  0x87   :  { %51 = vst.msk [vmem:[%s549_s2] sm:$0xff] %vm50_vm1, %v406_v6  ;;  %v55_v8 = vsel %vm50_vm1, %v406_v6, -inf  ;;  %v58_v9 = vsel %vm50_vm1, %v408_v7, -inf  ;;  %v97_v30 = vand.u32 2147483647, %v406_v6 }
  0x88   :  { %56 = vmax.xlane.f32.xlu0 %v55_v8  ;;  %52 = vst.msk [vmem:[%s549_s2 + $0x8] sm:$0xff] %vm50_vm1, %v408_v7  ;;  %v98_v1 = vand.u32 2147483647, %v408_v7 }
  0x90   :  { %59 = vmax.xlane.f32.xlu0 %v58_v9 }
  0xfb   :  { %v426_v12 = vpop.xlane.xlu0 %56 }
  0xfc   :  { %vm61_vm2 = vcmp.eq.f32.partialorder %v406_v6, %v426_v12  ;;  %v99_v31 = vmax.f32 %v97_v30, %v426_v12  ;;  %v137_v38 = vsub.f32 %v406_v6, %v426_v12  ;;  %v103_v58 = vsub.f32 %v426_v12, %v406_v6 }
  0xfd   :  { %v63_v13 = vsel %vm61_vm2, %v424_v11, 8 }
  0xfe   :  { %v65_v14 = vsel %vm50_vm1, %v63_v13, 2147483647  ;;  %v101_v32 = vmax.f32 %v99_v31, 1e-30  ;;  %v139_v44 = vmin.f32 %v137_v38, 0.0 }
  0xff   :  { %v67_v15 = vshra.s32 %v65_v14, 16  ;;  %v66_v22 = vand.u32 65535, %v65_v14 }
 0x100   :  { %339 = vrcp.f32 %v101_v32  ;;  %v116_v45 = vand.u32 2147483648, %v101_v32  ;;  %vm110_vm8 = vweird.f32 %v101_v32  ;;  %v114_v47 = vand.u32 2147483647, %v101_v32 }
 0x101   :  { %v69_v16 = vcvt.s32.f32 %v67_v15  ;;  %v68_v24 = vcvt.s32.f32 %v66_v22  ;;  %v141_v53 = vmul.f32 1.442695, %v139_v44 }
 0x102   :  { %v117_v52 = vor.u32 1.1754944e-38, %v116_v45  ;;  %vm115_vm10 = vcmp.eq.f32.partialorder %v114_v47, 8.507059e+37 }
 0x103   :  { %70 = vmin.xlane.f32.xlu1 %v69_v16  ;;  %v432_v17 = vpop.xlane.xlu0 %59  ;;  %341 = vpow2.f32 %v141_v53 }
 0x104   :  { %vm62_vm3 = vcmp.eq.f32.partialorder %v408_v7, %v432_v17  ;;  %v100_v2 = vmax.f32 %v98_v1, %v432_v17  ;;  %v138_v10 = vsub.f32 %v408_v7, %v432_v17 }
 0x105   :  { %v64_v18 = vsel %vm62_vm3, %v424_v11, 8 }
 0x106   :  { %v80_v19 = vsel %vm50_vm1, %v64_v18, 2147483647  ;;  %v340_v33 = vpop.eup %339  ;;  %v102_v3 = vmax.f32 %v100_v2, 1e-30  ;;  %v140_v13 = vmin.f32 %v138_v10, 0.0 }
 0x107   :  { %v82_v20 = vshra.s32 %v80_v19, 16  ;;  %v81_v26 = vand.u32 65535, %v80_v19  ;;  %v106_v34 = vmul.f32 %v340_v33, %v101_v32  ;;  %vm111_vm6 = vweird.f32 %v340_v33 }
 0x108   :  { %vm112_vm9 = vmor %vm110_vm8, %vm111_vm6  ;;  %343 = vrcp.f32 %v102_v3  ;;  %v131_v14 = vand.u32 2147483648, %v102_v3  ;;  %vm125_vm14 = vweird.f32 %v102_v3  ;;  %v129_v15 = vand.u32 2147483647, %v102_v3 }
 0x109   :  { %v84_v21 = vcvt.s32.f32 %v82_v20  ;;  %v83_v28 = vcvt.s32.f32 %v81_v26  ;;  %v107_v35 = vsub.f32 1.0, %v106_v34  ;;  %v342_v62 = vpop.eup %341  ;;  %v143_v18 = vmul.f32 1.442695, %v140_v13 }
 0x10a   :  { %v132_v20 = vor.u32 1.1754944e-38, %v131_v14  ;;  %vm130_vm2 = vcmp.eq.f32.partialorder %v129_v15, 8.507059e+37  ;;  %v104_v26 = vsub.f32 %v432_v17, %v408_v7 }
 0x10b   :  { %85 = vmin.xlane.f32.xlu1 %v84_v21  ;;  %v108_v37 = vmul.f32 %v340_v33, %v107_v35  ;;  %345 = vpow2.f32 %v143_v18 }
 0x10d   :  { %v109_v43 = vadd.f32 %v340_v33, %v108_v37 }
 0x10e   :  { %v344_v4 = vpop.eup %343 }
 0x10f   :  { %v113_v50 = vsel %vm112_vm9, %v340_v33, %v109_v43  ;;  %v121_v5 = vmul.f32 %v344_v4, %v102_v3  ;;  %vm126_vm13 = vweird.f32 %v344_v4 }
 0x110   :  { %v118_v56 = vsel %vm115_vm10, %v117_v52, %v113_v50  ;;  %vm127_vm15 = vmor %vm125_vm14, %vm126_vm13 }
 0x111   :  { %v119_v59 = vmul.f32 %v118_v56, %v103_v58  ;;  %v122_v8 = vsub.f32 1.0, %v121_v5  ;;  %v346_v33 = vpop.eup %345 }
 0x113   :  { %vm135_vm12 = vcmp.gt.f32.partialorder %v119_v59, 0.02  ;;  %v123_v9 = vmul.f32 %v344_v4, %v122_v8 }
 0x114   :  { %v145_v63 = vsel %vm135_vm12, 0.0, %v342_v62 }
 0x115   :  { %v147_v0 = vsel %vm50_vm1, %v145_v63, 0.0  ;;  %v124_v12 = vadd.f32 %v344_v4, %v123_v9 }
 0x176   :  { %v71_v23 = vpop.xlane.xlu1 %70 }
 0x177   :  { %vm72_vm4 = vcmp.eq.f32.partialorder %v69_v16, %v71_v23  ;;  %v77_v36 = vcvt.f32.s32 %v71_v23  ;;  %v128_v16 = vsel %vm127_vm15, %v344_v4, %v124_v12 }
 0x178   :  { %v73_v25 = vsel %vm72_vm4, %v68_v24, inf  ;;  %v133_v23 = vsel %vm130_vm2, %v132_v20, %v128_v16 }
 0x179   :  { %74 = vmin.xlane.f32.xlu2 %v73_v25  ;;  %v78_v40 = vshll.u32 %v77_v36, 16 }
 0x17e   :  { %v86_v27 = vpop.xlane.xlu1 %85 }
 0x17f   :  { %vm87_vm5 = vcmp.eq.f32.partialorder %v84_v21, %v86_v27  ;;  %v92_v46 = vcvt.f32.s32 %v86_v27 }
 0x180   :  { %v88_v29 = vsel %vm87_vm5, %v83_v28, inf  ;;  %v134_v28 = vmul.f32 %v133_v23, %v104_v26 }
 0x181   :  { %89 = vmin.xlane.f32.xlu2 %v88_v29  ;;  %v93_v54 = vshll.u32 %v92_v46, 16 }
 0x182   :  { %vm136_vm4 = vcmp.gt.f32.partialorder %v134_v28, 0.02 }
 0x1ec   :  { %v75_v39 = vpop.xlane.xlu2 %74 }
 0x1ed   :  { %v76_v41 = vcvt.f32.s32 %v75_v39  ;;  %v146_v39 = vsel %vm136_vm4, 0.0, %v346_v33 }
 0x1ee   :  { %v150_v45 = vsel %vm50_vm1, %v146_v39, 0.0 }
 0x1ef   :  { %v444_v42 = vadd.s32 %v78_v40, %v76_v41 }
 0x1f1   :  { %vm95_vm7 = vcmp.eq.s32.totalorder %v424_v11, %v444_v42 }
 0x1f2   :  { %v183_v48 = vsel %vm95_vm7, -inf, %v406_v6 }
 0x1f3   :  { %v185_v49 = vsel %vm50_vm1, %v183_v48, -inf }
 0x1f4   :  { %186 = vmax.xlane.f32.xlu0 %v185_v49  ;;  %v90_v51 = vpop.xlane.xlu2 %89 }
 0x1f5   :  { %v91_v55 = vcvt.f32.s32 %v90_v51 }
 0x1f7   :  { %v453_v57 = vadd.s32 %v93_v54, %v91_v55 }
 0x1f9   :  { %vm96_vm11 = vcmp.eq.s32.totalorder %v424_v11, %v453_v57 }
 0x1fa   :  { %v184_v60 = vsel %vm96_vm11, -inf, %v408_v7 }
 0x1fb   :  { %v188_v61 = vsel %vm50_vm1, %v184_v60, -inf }
 0x1fc   :  { %189 = vmax.xlane.f32.xlu1 %v188_v61 }
 0x204   :  { %148 = vadd.xlane.f32.xlu1 %v147_v0 }
 0x267   :  { %v187_v19 = vpop.xlane.xlu0 %186 }
 0x268   :  { %v225_v21 = vmax.f32 %v97_v30, %v187_v19  ;;  %vm191_vm0 = vcmp.eq.f32.partialorder %v183_v48, %v187_v19  ;;  %v265_v30 = vsub.f32 %v406_v6, %v187_v19  ;;  %v229_v52 = vsub.f32 %v187_v19, %v406_v6 }
 0x269   :  { %v193_v22 = vsel %vm191_vm0, %v424_v11, 8 }
 0x26a   :  { %v227_v24 = vmax.f32 %v225_v21, 1e-30  ;;  %v473_v25 = vsel %vm50_vm1, %v193_v22, 2147483647  ;;  %v267_v37 = vmin.f32 %v265_v30, 0.0 }
 0x26b   :  { %v197_v27 = vshra.s32 %v473_v25, 16  ;;  %v196_v15 = vand.u32 65535, %v473_v25 }
 0x26c   :  { %347 = vrcp.f32 %v227_v24  ;;  %v242_v46 = vand.u32 2147483648, %v227_v24  ;;  %v269_v47 = vmul.f32 1.442695, %v267_v37  ;;  %v240_v49 = vand.u32 2147483647, %v227_v24 }
 0x26d   :  { %v478_v29 = vcvt.s32.f32 %v197_v27  ;;  %vm236_vm6 = vweird.f32 %v227_v24  ;;  %v198_v16 = vcvt.s32.f32 %v196_v15 }
 0x26e   :  { %v243_v54 = vor.u32 1.1754944e-38, %v242_v46  ;;  %vm241_vm9 = vcmp.eq.f32.partialorder %v240_v49, 8.507059e+37 }
 0x26f   :  { %v190_v31 = vpop.xlane.xlu1 %189  ;;  %200 = vmin.xlane.f32.xlu2 %v478_v29 }
 0x270   :  { %v226_v32 = vmax.f32 %v98_v1, %v190_v31  ;;  %vm192_vm3 = vcmp.eq.f32.partialorder %v184_v60, %v190_v31  ;;  %v266_v44 = vsub.f32 %v408_v7, %v190_v31  ;;  %v230_v4 = vsub.f32 %v190_v31, %v408_v7 }
 0x271   :  { %v194_v34 = vsel %vm192_vm3, %v424_v11, 8 }
 0x272   :  { %v348_v35 = vpop.eup %347  ;;  %v228_v17 = vmax.f32 %v226_v32, 1e-30  ;;  %v484_v36 = vsel %vm50_vm1, %v194_v34, 2147483647  ;;  %v268_v53 = vmin.f32 %v266_v44, 0.0 }
 0x273   :  { %v212_v38 = vshra.s32 %v484_v36, 16  ;;  %v232_v40 = vmul.f32 %v348_v35, %v227_v24  ;;  %vm237_vm5 = vweird.f32 %v348_v35  ;;  %v211_v19 = vand.u32 65535, %v484_v36 }
 0x274   :  { %349 = vrcp.f32 %v228_v17  ;;  %vm238_vm8 = vmor %vm236_vm6, %vm237_vm5  ;;  %v271_v61 = vmul.f32 1.442695, %v268_v53  ;;  %v257_v62 = vand.u32 2147483648, %v228_v17  ;;  %v255_v0 = vand.u32 2147483647, %v228_v17 }
 0x275   :  { %v487_v41 = vcvt.s32.f32 %v212_v38  ;;  %v233_v43 = vsub.f32 1.0, %v232_v40  ;;  %351 = vpow2.f32 %v269_v47  ;;  %vm251_vm14 = vweird.f32 %v228_v17 }
 0x276   :  { %353 = vpow2.f32 %v271_v61  ;;  %v258_v3 = vor.u32 1.1754944e-38, %v257_v62  ;;  %vm256_vm0 = vcmp.eq.f32.partialorder %v255_v0, 8.507059e+37  ;;  %v213_v22 = vcvt.s32.f32 %v211_v19 }
 0x277   :  { %215 = vmin.xlane.f32.xlu0 %v487_v41  ;;  %151 = vadd.xlane.f32.xlu2 %v150_v45  ;;  %v234_v48 = vmul.f32 %v348_v35, %v233_v43  ;;  %v149_v20 = vpop.xlane.xlu1 %148 }
 0x278   :  { %355 = vrcp.f32 %v149_v20  ;;  %v164_v36 = vand.u32 2147483648, %v149_v20  ;;  %vm158_vm4 = vweird.f32 %v149_v20  ;;  %v162_v38 = vand.u32 2147483647, %v149_v20 }
 0x279   :  { %v235_v50 = vadd.f32 %v348_v35, %v234_v48 }
 0x27a   :  { %v350_v51 = vpop.eup %349  ;;  %v165_v47 = vor.u32 1.1754944e-38, %v164_v36 }
 0x27b   :  { %v239_v55 = vsel %vm238_vm8, %v348_v35, %v235_v50  ;;  %v247_v56 = vmul.f32 %v350_v51, %v228_v17  ;;  %vm252_vm12 = vweird.f32 %v350_v51  ;;  %v352_v1 = vpop.eup %351 }
 0x27c   :  { %v244_v58 = vsel %vm241_vm9, %v243_v54, %v239_v55  ;;  %vm253_vm15 = vmor %vm251_vm14, %vm252_vm12  ;;  %v354_v12 = vpop.eup %353  ;;  %vm163_vm9 = vcmp.eq.f32.partialorder %v162_v38, 8.507059e+37  ;;  %vm311_vm12 = vcmp.eq.s32.totalorder %v424_v11, 0  ;;  %vm314_vm14 = vcmask 15360  }
 0x27d   :  { %v245_v59 = vmul.f32 %v244_v58, %v229_v52  ;;  %v248_v60 = vsub.f32 1.0, %v247_v56 }
 0x27e   :  { %v356_v25 = vpop.eup %355 }
 0x27f   :  { %vm261_vm10 = vcmp.gt.f32.partialorder %v245_v59, 0.02  ;;  %v249_v63 = vmul.f32 %v350_v51, %v248_v60  ;;  %v154_v26 = vmul.f32 %v356_v25, %v149_v20 }
 0x280   :  { %vm263_vm13 = vmor %vm261_vm10, %vm95_vm7 }
 0x281   :  { %v250_v6 = vadd.f32 %v350_v51, %v249_v63  ;;  %v273_v2 = vsel %vm263_vm13, 0.0, %v352_v1  ;;  %v155_v28 = vsub.f32 1.0, %v154_v26 }
 0x282   :  { %v275_v5 = vsel %vm50_vm1, %v273_v2, 0.0 }
 0x283   :  { %v254_v8 = vsel %vm253_vm15, %v350_v51, %v250_v6  ;;  %276 = vadd.xlane.f32.xlu0 %v275_v5  ;;  %v156_v30 = vmul.f32 %v356_v25, %v155_v28 }
 0x284   :  { %v259_v9 = vsel %vm256_vm0, %v258_v3, %v254_v8 }
 0x285   :  { %v260_v10 = vmul.f32 %v259_v9, %v230_v4  ;;  %v157_v35 = vadd.f32 %v356_v25, %v156_v30 }
 0x287   :  { %vm262_vm2 = vcmp.gt.f32.partialorder %v260_v10, 0.02 }
 0x288   :  { %vm264_vm7 = vmor %vm262_vm2, %vm96_vm11  ;;  %vm159_vm11 = vweird.f32 %v356_v25 }
 0x289   :  { %v274_v13 = vsel %vm264_vm7, 0.0, %v354_v12  ;;  %vm512_vm5 = vmor %vm158_vm4, %vm159_vm11 }
 0x28a   :  { %v278_v14 = vsel %vm50_vm1, %v274_v13, 0.0  ;;  %v161_v44 = vsel %vm512_vm5, %v356_v25, %v157_v35 }
 0x28b   :  { %279 = vadd.xlane.f32.xlu1 %v278_v14  ;;  %v166_v51 = vsel %vm163_vm9, %v165_v47, %v161_v44 }
 0x2e2   :  { %v503_v7 = vpop.xlane.xlu2 %200 }
 0x2e3   :  { %vm202_vm3 = vcmp.eq.f32.partialorder %v478_v29, %v503_v7  ;;  %v207_v8 = vcvt.f32.s32 %v503_v7 }
 0x2e4   :  { %v203_v18 = vsel %vm202_vm3, %v198_v16, inf }
 0x2e5   :  { %204 = vmin.xlane.f32.xlu2 %v203_v18  ;;  %v208_v10 = vshll.u32 %v207_v8, 16 }
 0x2ea   :  { %v508_v21 = vpop.xlane.xlu0 %215  ;;  %v152_v24 = vpop.xlane.xlu2 %151 }
 0x2eb   :  { %vm217_vm1 = vcmp.eq.f32.partialorder %v487_v41, %v508_v21  ;;  %357 = vrcp.f32 %v152_v24  ;;  %vm173_vm0 = vweird.f32 %v152_v24  ;;  %v179_v56 = vand.u32 2147483648, %v152_v24 }
 0x2ec   :  { %v218_v23 = vsel %vm217_vm1, %v213_v22, inf  ;;  %v177_v60 = vand.u32 2147483647, %v152_v24  ;;  %v222_v15 = vcvt.f32.s32 %v508_v21 }
 0x2ed   :  { %219 = vmin.xlane.f32.xlu0 %v218_v23  ;;  %v180_v1 = vor.u32 1.1754944e-38, %v179_v56 }
 0x2ee   :  { %vm178_vm11 = vcmp.eq.f32.partialorder %v177_v60, 8.507059e+37  ;;  %v223_v18 = vshll.u32 %v222_v15, 16 }
 0x2f1   :  { %v358_v29 = vpop.eup %357 }
 0x2f2   :  { %v169_v31 = vmul.f32 %v358_v29, %v152_v24  ;;  %vm174_vm15 = vweird.f32 %v358_v29 }
 0x2f3   :  { %vm175_vm7 = vmor %vm173_vm0, %vm174_vm15 }
 0x2f4   :  { %v170_v17 = vsub.f32 1.0, %v169_v31 }
 0x2f6   :  { %v277_v27 = vpop.xlane.xlu0 %276  ;;  %v171_v45 = vmul.f32 %v358_v29, %v170_v17 }
 0x2f7   :  { %359 = vrcp.f32 %v277_v27  ;;  %v292_v39 = vand.u32 2147483648, %v277_v27  ;;  %v290_v43 = vand.u32 2147483647, %v277_v27  ;;  %vm286_vm8 = vweird.f32 %v277_v27 }
 0x2f8   :  { %v172_v53 = vadd.f32 %v358_v29, %v171_v45 }
 0x2f9   :  { %v293_v49 = vor.u32 1.1754944e-38, %v292_v39  ;;  %vm291_vm13 = vcmp.eq.f32.partialorder %v290_v43, 8.507059e+37 }
 0x2fa   :  { %v176_v63 = vsel %vm175_vm7, %v358_v29, %v172_v53 }
 0x2fb   :  { %v181_v3 = vsel %vm178_vm11, %v180_v1, %v176_v63 }
 0x2fd   :  { %v360_v32 = vpop.eup %359 }
 0x2fe   :  { %v280_v33 = vpop.xlane.xlu1 %279  ;;  %v282_v34 = vmul.f32 %v360_v32, %v277_v27  ;;  %vm287_vm6 = vweird.f32 %v360_v32 }
 0x2ff   :  { %361 = vrcp.f32 %v280_v33  ;;  %vm288_vm10 = vmor %vm286_vm8, %vm287_vm6  ;;  %v307_v58 = vand.u32 2147483648, %v280_v33  ;;  %v305_v62 = vand.u32 2147483647, %v280_v33  ;;  %vm301_vm3 = vweird.f32 %v280_v33 }
 0x300   :  { %v283_v37 = vsub.f32 1.0, %v282_v34 }
 0x301   :  { %v308_v6 = vor.u32 1.1754944e-38, %v307_v58  ;;  %vm306_vm4 = vcmp.eq.f32.partialorder %v305_v62, 8.507059e+37 }
 0x302   :  { %v284_v41 = vmul.f32 %v360_v32, %v283_v37 }
 0x304   :  { %v285_v48 = vadd.f32 %v360_v32, %v284_v41 }
 0x305   :  { %v362_v46 = vpop.eup %361 }
 0x306   :  { %v297_v50 = vmul.f32 %v362_v46, %v280_v33  ;;  %v289_v52 = vsel %vm288_vm10, %v360_v32, %v285_v48  ;;  %vm302_vm2 = vweird.f32 %v362_v46 }
 0x307   :  { %v294_v54 = vsel %vm291_vm13, %v293_v49, %v289_v52  ;;  %vm303_vm1 = vmor %vm301_vm3, %vm302_vm2 }
 0x308   :  { %v298_v55 = vsub.f32 1.0, %v297_v50  ;;  %v317_v59 = vsel %vm311_vm12, %v166_v51, %v294_v54 }
 0x309   :  { %319 = vst.msk [vmem:[%s550_s4] sm:$0xff] %vm314_vm14, %v317_v59 }
 0x30a   :  { %v299_v61 = vmul.f32 %v362_v46, %v298_v55 }
 0x30c   :  { %v300_v0 = vadd.f32 %v362_v46, %v299_v61 }
 0x30e   :  { %v304_v2 = vsel %vm303_vm1, %v362_v46, %v300_v0 }
 0x30f   :  { %v309_v4 = vsel %vm306_vm4, %v308_v6, %v304_v2 }
 0x310   :  { %v318_v5 = vsel %vm311_vm12, %v181_v3, %v309_v4 }
 0x311   :  { %320 = vst.msk [vmem:[%s550_s4 + $0x8] sm:$0xff] %vm314_vm14, %v318_v5 }
 0x358   :  { %v205_v9 = vpop.xlane.xlu2 %204 }
 0x359   :  { %v206_v12 = vcvt.f32.s32 %v205_v9 }
 0x35b   :  { %v209_v13 = vadd.s32 %v208_v10, %v206_v12 }
 0x35d   :  { %v312_v14 = vsel %vm311_vm12, %v444_v42, %v209_v13 }
 0x35e   :  { %315 = vst.msk [vmem:[%s551_s3] sm:$0xff] %vm314_vm14, %v312_v14 }
 0x360   :  { %v220_v16 = vpop.xlane.xlu0 %219 }
 0x361   :  { %v221_v19 = vcvt.f32.s32 %v220_v16 }
 0x363   :  { %v224_v20 = vadd.s32 %v223_v18, %v221_v19 }
 0x365   :  { %v313_v7 = vsel %vm311_vm12, %v453_v57, %v224_v20 }
 0x366   :  { %316 = vst.msk [vmem:[%s551_s3 + $0x8] sm:$0xff] %vm314_vm14, %v313_v7 }

// kernel: grin_moe_block.3
= control target key start
LH: loop header
LB: loop body
LE: loop exit
PB: predicated region body
PF: predicated region fallthrough
CT: control target
= control target key end

     0   :  { %s745_s24 = smov [#allocation3]   ;;  %s746_s25 = smov [#allocation4]   ;;  %s903_s0 = inlined_call_operand.vmem [shape: s32[9], index: 0, kind: input, shape index: {}]   ;;  %s904_s2 = inlined_call_operand.vmem [shape: f32[288,32], index: 2, kind: input, shape index: {}]   ;;  %s905_s3 = inlined_call_operand.vmem [shape: f32[8,32,128], index: 3, kind: input, shape index: {}]   ;;  %s906_s4 = inlined_call_operand.vmem [shape: f32[8,64,32], index: 4, kind: input, shape index: {}]   ;;  %s907_s5 = inlined_call_operand.vmem [shape: f32[288,32], index: 5, kind: output, shape index: {}]   ;;  %s908_s1 = inlined_call_operand.vmem [shape: s32[9], index: 1, kind: input, shape index: {}]  }
   0x1   :  { %s11_s20 = sshll.u32 %s903_s0, 4  ;;  %s16_s23 = sshll.u32 %s908_s1, 4  ;;  %s12_s20 = int_to_ptr.vmem [resolvable:$true] %s11_s20  ;;  %s17_s23 = int_to_ptr.vmem [resolvable:$true] %s16_s23 }
   0x2   :  { %14 = dma.vmem_to_smem %s12_s20, 16, %s745_s24, [#allocation2] }
   0x3   :  { %19 = dma.vmem_to_smem %s17_s23, 16, %s746_s25, [#allocation2] }
   0x4   :  { %731 = dma.done.wait [#allocation2], 32 }
   0x5   :  { %732 = vsyncadd [#allocation2], 4294967264 }
   0x6   :  { %22 = sfence }
   0x7   :  { %s785_s26 = smov 0   ;;  %s787_s27 = smov 0  }
   0x8   :  { %s789_s28 = smov 0  }
   0x9 LB: > { %s40_s0 = sadd.s32 1, %s739_s27  ;;  %p613_p0 = scmp.ge.s32.totalorder %s743_s28, 1  ;;  %s743_s28 = sphi %s789_s28, %s28_s28   ;;  %s739_s27 = sphi %s787_s27, %s912_s27   ;;  %s735_s26 = sphi %s785_s26, %s911_s26  }
   0xa   : > { %p42_p1 = scmp.ge.s32.totalorder %s40_s0, 9  ;;  %p205_p2 = scmp.lt.s32.totalorder %s743_s28, 10 }
   0xc   : > { %s914_s0 = smov (%p42_p1, %s40_s0), 0  ;;  %p206_p3 = pnand %p613_p0, %p205_p2 }
   0xd   : > { %s614_s1 = sshll.u32 (!%p206_p3), %s735_s26, 2  ;;  %s254_s29 = sld [smem:[#allocation3 + %s735_s26]] (!%p206_p3) }
   0xe   : > { %209 = sbr.rel (%p206_p3) target bundleno = 442 (0x1ba), region = 32  ;;  %p249_p4 = scmp.lt.s32.totalorder (!%p206_p3), %s614_s1, 35 }
   0xf   : > { %s264_s30 = sld [smem:[#allocation3 + %s735_s26]] (!%p206_p3) }
  0x10   : > { %s291_s6 = sld [smem:[#allocation4 + %s735_s26]] (!%p206_p3) }
  0x13   : > { %s916_s1 = smov (!%p249_p4, %s614_s1), 35  ;;  %vm286_vm0 = vcmask 261120   ;;  %p255_p5 = scmp.lt.s32.totalorder %s254_s29, 7  ;;  %v747_v0 = vmov 0.0  }
  0x14   : > { %s615_s7 = sshll.u32 %s916_s1, 3 }
  0x15   : > { %s806_s10 = scalar_lea.vmem %s904_s2, %s615_s7  ;;  %p266_p6 = scmp.lt.s32.totalorder %s264_s30, 7 }
  0x16   : > { %s811_s13 = scalar_lea.vmem %s907_s5, %s615_s7  ;;  %s918_s29 = smov (!%p255_p5, %s254_s29), 7 }
  0x17   : > { %287 = vst.msk [vmem:[%s811_s13] sm:$0xff] %vm286_vm0, %v747_v0  ;;  %s920_s30 = smov (!%p266_p6, %s264_s30), 7  ;;  %s637_s14 = sshll.u32 %s918_s29, 5 }
  0x18   : > { %288 = vst.msk [vmem:[%s811_s13 + $0x8] sm:$0xff] %vm286_vm0, %v747_v0  ;;  %s262_s17 = scalar_lea.vmem %s905_s3, %s637_s14  ;;  %s638_s18 = sshll.u32 %s920_s30, 6 }
  0x19   : > { %289 = vst.msk [vmem:[%s811_s13 + $0x10] sm:$0xff] %vm286_vm0, %v747_v0  ;;  %s827_s21 = scalar_lea.vmem %s906_s4, %s638_s18  ;;  %p622_p7 = scmp.eq.s32.totalorder %s291_s6, 0 }
  0x1a   : > { %290 = vst.msk [vmem:[%s811_s13 + $0x18] sm:$0xff] %vm286_vm0, %v747_v0  ;;  %s748_s22 = smov (!%p622_p7), 64  }
  0x1b   : > { %295 = sbr.rel (%p622_p7) target bundleno = 442 (0x1ba), region = 40 }
  0x20   : > { %v303_v1 = vld [vmem:[%s262_s17 + $0x18] sm:$0xff]  ;;  %v302_v2 = vld [vmem:[%s262_s17 + $0x10] sm:$0xff]  ;;  %v301_v3 = vld [vmem:[%s262_s17 + $0x8] sm:$0xff]  ;;  %vm458_vm12 = vcmask 523264  }
  0x21   : > { %329 = vmatpush.msra.mxu0 %v303_v1  ;;  %639 = vmatpush.msra.mxu3 %v303_v1  ;;  %v300_v4 = vld [vmem:[%s262_s17] sm:$0xff]  ;;  %v297_v6 = vld [vmem:[%s806_s10 + $0x8] sm:$0xff]  ;;  %v298_v7 = vld [vmem:[%s806_s10 + $0x10] sm:$0xff] }
  0x22   : > { %v296_v5 = vld [vmem:[%s806_s10] sm:$0xff]  ;;  %v299_v8 = vld [vmem:[%s806_s10 + $0x18] sm:$0xff]  ;;  %v456_v12 = vld [vmem:[%s827_s21 + $0x30] sm:$0xff] }
  0x23   : > { %330 = vmatpush.msra.mxu0 %v302_v2  ;;  %640 = vmatpush.msra.mxu3 %v302_v2  ;;  %v457_v11 = vld [vmem:[%s827_s21 + $0x38] sm:$0xff]  ;;  %v455_v13 = vld [vmem:[%s827_s21 + $0x28] sm:$0xff]  ;;  %v454_v16 = vld [vmem:[%s827_s21 + $0x20] sm:$0xff] }
  0x24   : > { %643 = vmatpush.msra.mxu2 %v457_v11  ;;  %479 = vmatpush.msra.mxu1 %v457_v11  ;;  %v453_v17 = vld [vmem:[%s827_s21 + $0x18] sm:$0xff]  ;;  %v452_v18 = vld [vmem:[%s827_s21 + $0x10] sm:$0xff]  ;;  %v451_v19 = vld [vmem:[%s827_s21 + $0x8] sm:$0xff] }
  0x25   : > { %331 = vmatpush.msra.mxu0 %v301_v3  ;;  %641 = vmatpush.msra.mxu3 %v301_v3  ;;  %v450_v28 = vld [vmem:[%s827_s21] sm:$0xff] }
  0x26   : > { %644 = vmatpush.msra.mxu2 %v456_v12  ;;  %480 = vmatpush.msra.mxu1 %v456_v12 }
  0x27   : > { %332 = vmatpush.msra.mxu0 %v300_v4  ;;  %642 = vmatpush.msra.mxu3 %v300_v4 }
  0x28   : > { %623 = vmatmul.msk.f32.vlgmr.msra.gmra.mxu0 %vm286_vm0, %v296_v5  ;;  %624 = vmatmul.msk.f32.vlgmr.msra.gmra.mxu3 %vm286_vm0, %v297_v6 }
  0x29   : > { %645 = vmatpush.msra.mxu2 %v455_v13  ;;  %481 = vmatpush.msra.mxu1 %v455_v13 }
  0x2b   : > { %646 = vmatpush.msra.mxu2 %v454_v16  ;;  %482 = vmatpush.msra.mxu1 %v454_v16 }
  0x2d   : > { %647 = vmatpush.msra.mxu2 %v453_v17  ;;  %483 = vmatpush.msra.mxu1 %v453_v17 }
  0x2f   : > { %648 = vmatpush.msra.mxu2 %v452_v18  ;;  %484 = vmatpush.msra.mxu1 %v452_v18 }
  0x30   : > { %625 = vmatmul.msk.f32.gmra.mxu3 %vm286_vm0, %v298_v7 }
  0x31   : > { %649 = vmatpush.msra.mxu2 %v451_v19  ;;  %485 = vmatpush.msra.mxu1 %v451_v19 }
  0x33   : > { %650 = vmatpush.msra.mxu2 %v450_v28  ;;  %486 = vmatpush.msra.mxu1 %v450_v28 }
  0x38   : > { %626 = vmatmul.msk.f32.gmra.mxu3 %vm286_vm0, %v299_v8 }
  0xa5   : > { %v845_v14 = vpop.f32.mrf.mxu0 }
  0xa6   : > { %v627_v21 = vmul.f32 -1.442695, %v845_v14 }
  0xab   : > { %v837_v9 = vpop.f32.mrf.mxu3 }
  0xac   : > { %v628_v25 = vmul.f32 -1.442695, %v837_v9 }
  0xb3   : > { %v839_v10 = vpop.f32.mrf.mxu3 }
  0xb4   : > { %434 = vrot.lane.b32.xlu0 %v839_v10, %s748_s22  ;;  %v629_v20 = vmul.f32 -1.442695, %v839_v10 }
  0xb6   : > { %679 = vpow2.f32 %v629_v20 }
  0xb7   : > { %681 = vpow2.f32 %v627_v21 }
  0xbb   : > { %v847_v15 = vpop.f32.mrf.mxu3 }
  0xbc   : > { %436 = vrot.lane.b32.xlu1 %v847_v15, %s748_s22  ;;  %430 = vrot.lane.b32.xlu0 %v845_v14, %s748_s22  ;;  %v630_v22 = vmul.f32 -1.442695, %v847_v15  ;;  %v680_v23 = vpop.eup %679 }
  0xbd   : > { %v360_v24 = vadd.f32 1.0, %v680_v23  ;;  %v682_v26 = vpop.eup %681  ;;  %v448_v23 = vld [vmem:[%s811_s13 + $0x10] sm:$0xff] }
  0xbe   : > { %683 = vpow2.f32 %v630_v22  ;;  %v358_v29 = vadd.f32 1.0, %v682_v26 }
  0xbf   : > { %685 = vrcp.f32 %v360_v24  ;;  %v403_v45 = vand.u32 2147483648, %v360_v24  ;;  %vm397_vm2 = vweird.f32 %v360_v24  ;;  %v401_v46 = vand.u32 2147483647, %v360_v24 }
  0xc0   : > { %687 = vpow2.f32 %v628_v25  ;;  %vm367_vm4 = vweird.f32 %v358_v29  ;;  %v371_v52 = vand.u32 2147483647, %v358_v29  ;;  %v373_v53 = vand.u32 2147483648, %v358_v29  ;;  %v446_v25 = vld [vmem:[%s811_s13] sm:$0xff] }
  0xc1   : > { %689 = vrcp.f32 %v358_v29  ;;  %v404_v51 = vor.u32 1.1754944e-38, %v403_v45  ;;  %vm402_vm6 = vcmp.eq.f32.partialorder %v401_v46, 8.507059e+37 }
  0xc2   : > { %vm372_vm10 = vcmp.eq.f32.partialorder %v371_v52, 8.507059e+37  ;;  %v374_v62 = vor.u32 1.1754944e-38, %v373_v53 }
  0xc4   : > { %432 = vrot.lane.b32.xlu1 %v837_v9, %s748_s22  ;;  %v684_v27 = vpop.eup %683 }
  0xc5   : > { %v361_v30 = vadd.f32 1.0, %v684_v27  ;;  %v686_v31 = vpop.eup %685 }
  0xc6   : > { %v688_v32 = vpop.eup %687  ;;  %v393_v33 = vmul.f32 %v686_v31, %v360_v24  ;;  %vm398_vm1 = vweird.f32 %v686_v31 }
  0xc7   : > { %691 = vrcp.f32 %v361_v30  ;;  %v861_v34 = vadd.f32 1.0, %v688_v32  ;;  %v690_v35 = vpop.eup %689  ;;  %vm399_vm3 = vmor %vm397_vm2, %vm398_vm1  ;;  %v418_v59 = vand.u32 2147483648, %v361_v30  ;;  %vm412_vm9 = vweird.f32 %v361_v30 }
  0xc8   : > { %v394_v36 = vsub.f32 1.0, %v393_v33  ;;  %v363_v38 = vmul.f32 %v690_v35, %v358_v29  ;;  %vm368_vm5 = vweird.f32 %v690_v35  ;;  %v416_v60 = vand.u32 2147483647, %v361_v30  ;;  %v449_v29 = vld [vmem:[%s811_s13 + $0x18] sm:$0xff] }
  0xc9   : > { %693 = vrcp.f32 %v861_v34  ;;  %vm865_vm8 = vmor %vm367_vm4, %vm368_vm5  ;;  %v419_v4 = vor.u32 1.1754944e-38, %v418_v59  ;;  %v388_v8 = vand.u32 2147483648, %v861_v34  ;;  %vm382_vm15 = vweird.f32 %v861_v34 }
  0xca   : > { %v395_v40 = vmul.f32 %v686_v31, %v394_v36  ;;  %v364_v41 = vsub.f32 1.0, %v363_v38  ;;  %vm417_vm13 = vcmp.eq.f32.partialorder %v416_v60, 8.507059e+37  ;;  %v386_v12 = vand.u32 2147483647, %v861_v34 }
  0xcb   : > { %v389_v20 = vor.u32 1.1754944e-38, %v388_v8 }
  0xcc   : > { %v396_v43 = vadd.f32 %v686_v31, %v395_v40  ;;  %v365_v47 = vmul.f32 %v690_v35, %v364_v41  ;;  %vm387_vm2 = vcmp.eq.f32.partialorder %v386_v12, 8.507059e+37 }
  0xcd   : > { %v692_v37 = vpop.eup %691 }
  0xce   : > { %v408_v39 = vmul.f32 %v692_v37, %v361_v30  ;;  %v400_v49 = vsel %vm399_vm3, %v686_v31, %v396_v43  ;;  %v366_v55 = vadd.f32 %v690_v35, %v365_v47  ;;  %vm413_vm7 = vweird.f32 %v692_v37  ;;  %v447_v31 = vld [vmem:[%s811_s13 + $0x8] sm:$0xff] }
  0xcf   : > { %v694_v44 = vpop.eup %693  ;;  %v405_v54 = vsel %vm402_vm6, %v404_v51, %v400_v49  ;;  %vm414_vm11 = vmor %vm412_vm9, %vm413_vm7 }
  0xd0   : > { %v409_v42 = vsub.f32 1.0, %v408_v39  ;;  %v378_v50 = vmul.f32 %v694_v44, %v861_v34  ;;  %v424_v61 = vmul.f32 %v405_v54, %v839_v10  ;;  %v370_v0 = vsel %vm865_vm8, %v690_v35, %v366_v55 }
  0xd1   : > { %v375_v5 = vsel %vm372_vm10, %v374_v62, %v370_v0  ;;  %vm383_vm14 = vweird.f32 %v694_v44 }
  0xd2   : > { %v410_v48 = vmul.f32 %v692_v37, %v409_v42  ;;  %v379_v57 = vsub.f32 1.0, %v378_v50  ;;  %v422_v10 = vmul.f32 %v375_v5, %v845_v14  ;;  %vm384_vm1 = vmor %vm382_vm15, %vm383_vm14 }
  0xd4   : > { %v411_v56 = vadd.f32 %v692_v37, %v410_v48  ;;  %v380_v3 = vmul.f32 %v694_v44, %v379_v57 }
  0xd6   : > { %v415_v1 = vsel %vm414_vm11, %v692_v37, %v411_v56  ;;  %v381_v7 = vadd.f32 %v694_v44, %v380_v3 }
  0xd7   : > { %v420_v6 = vsel %vm417_vm13, %v419_v4, %v415_v1 }
  0xd8   : > { %v425_v11 = vmul.f32 %v420_v6, %v847_v15  ;;  %v385_v19 = vsel %vm384_vm1, %v694_v44, %v381_v7 }
  0xd9   : > { %v390_v14 = vsel %vm387_vm2, %v389_v20, %v385_v19 }
  0xda   : > { %v423_v15 = vmul.f32 %v390_v14, %v837_v9 }
 0x126   : > { %v435_v63 = vpop.permute.xlu0 %434 }
 0x127   : > { %v444_v2 = vmul.f32 %v435_v63, %v424_v61 }
 0x129   : > { %633 = vmatmul.msk.f32.vlgmr.msra.gmra.mxu2 %vm458_vm12, %v444_v2 }
 0x12e   : > { %v437_v13 = vpop.permute.xlu1 %436  ;;  %v431_v16 = vpop.permute.xlu0 %430 }
 0x12f   : > { %v445_v17 = vmul.f32 %v437_v13, %v425_v11  ;;  %v442_v18 = vmul.f32 %v431_v16, %v422_v10 }
 0x131   : > { %631 = vmatmul.msk.f32.vlgmr.msra.gmra.mxu1 %vm458_vm12, %v442_v18  ;;  %634 = vmatmul.msk.f32.gmra.mxu2 %vm458_vm12, %v445_v17 }
 0x136   : > { %v433_v21 = vpop.permute.xlu1 %432 }
 0x137   : > { %v443_v22 = vmul.f32 %v433_v21, %v423_v15 }
 0x139   : > { %632 = vmatmul.msk.f32.gmra.mxu1 %vm458_vm12, %v443_v22 }
 0x1ac   : > { %v494_v24 = vpop.f32.mrf.mxu2 }
 0x1ad   : > { %v502_v26 = vadd.f32 %v494_v24, %v448_v23 }
 0x1ae   : > { %v488_v27 = vpop.f32.mrf.mxu1 }
 0x1af   : > { %506 = vst.msk [vmem:[%s811_s13 + $0x10] sm:$0xff] %vm286_vm0, %v502_v26  ;;  %v500_v28 = vadd.f32 %v488_v27, %v446_v25 }
 0x1b1   : > { %504 = vst.msk [vmem:[%s811_s13] sm:$0xff] %vm286_vm0, %v500_v28 }
 0x1b4   : > { %v497_v30 = vpop.f32.mrf.mxu2 }
 0x1b5   : > { %v503_v9 = vadd.f32 %v497_v30, %v449_v29 }
 0x1b6   : > { %v491_v32 = vpop.f32.mrf.mxu1 }
 0x1b7   : > { %507 = vst.msk [vmem:[%s811_s13 + $0x18] sm:$0xff] %vm286_vm0, %v503_v9  ;;  %v501_v33 = vadd.f32 %v491_v32, %v447_v31 }
 0x1b9   : > { %505 = vst.msk [vmem:[%s811_s13 + $0x8] sm:$0xff] %vm286_vm0, %v501_v33 }
 0x1ba PF: > { %s28_s28 = sadd.s32 1, %s743_s28   ;;  %s911_s26 = smov %s739_s27 }
 0x1bb   : > { %p25_p8 = scmp.ge.s32.totalorder %s28_s28, 11   ;;  %s912_s27 = smov %s914_s0 }
 0x1bd   :  { %27 = sbr.rel (!%p25_p8) target bundleno = 9 (0x9), region = 76 }

</bundles_post_ra>
